<compile_context>
chip_gen: v5e
topology: v5e:2x2
jax: 0.10.0
libtpu: 0.0.40
codegen_flags: <defaults>
</compile_context>

<pallas_src>
import functools

import jax
import jax.numpy as jnp
from jax import lax
from jax.experimental import pallas as pl
from jax.experimental.pallas import tpu as pltpu


def _round_up(x, m):
    return -(-x // m) * m


def _conv3x3_kernel(w_ref, xc_ref, xt_ref, xb_ref, o_ref, slab_ref, patches_ref,
                    *, W, TH, PAD_L):
    """One (batch, row-block) step of the 3x3 / stride-1 / pad-1 convolution.

    w_ref:       (Co, 9*CP)      im2col weight in compute dtype (resident)
    xc_ref:      (1, C, TH*W)    centre rows r0 .. r0+TH-1 of this block
    xt_ref:      (1, C, halo_w)  block whose LAST W columns are row r0-1
    xb_ref:      (1, C, halo_w)  block whose FIRST W columns are row r0+TH
    o_ref:       (1, Co, TH*W)   output row-block; lane dim = flattened spatial
    slab_ref:    (CP, slab_w)    scratch: H-halo'd tile with lane guards
    patches_ref: (9*CP, TH*W)    scratch: im2col operand for the single matmul
    """
    C = xc_ref.shape[1]
    CP = slab_ref.shape[0]
    THW = TH * W
    halo_w = xt_ref.shape[2]
    cd = slab_ref.dtype

    hb = pl.program_id(1)
    n_hb = pl.num_programs(1)

    # Pad-channel rows (C..CP) ride along in the same stores as the real rows,
    # so they are guaranteed zero every step at no extra vector-store cost and
    # with no cross-core one-time-init hazard.
    if CP > C:
        def pad_rows(v, width):
            return jnp.concatenate(
                [v.astype(cd), jnp.zeros((CP - C, width), dtype=cd)], axis=0)
    else:
        def pad_rows(v, width):
            del width
            return v.astype(cd)

    # ---- Stage centre rows + the two 1-row halos into the slab --------------
    # Destination offset PAD_L + W is 128-aligned by construction of PAD_L.
    slab_ref[:, PAD_L + W:PAD_L + W + THW] = pad_rows(xc_ref[0], THW)

    # Top halo row (r0-1), or zeros at the top edge of the image.
    @pl.when(hb == 0)
    def _():
        slab_ref[:, PAD_L:PAD_L + W] = jnp.zeros((CP, W), dtype=cd)

    @pl.when(hb > 0)
    def _():
        slab_ref[:, PAD_L:PAD_L + W] = pad_rows(
            xt_ref[0, :, halo_w - W:halo_w], W)

    # Bottom halo row (r0+TH), or zeros at the bottom edge of the image.
    @pl.when(hb == n_hb - 1)
    def _():
        slab_ref[:, PAD_L + (TH + 1) * W:PAD_L + (TH + 2) * W] = jnp.zeros(
            (CP, W), dtype=cd)

    @pl.when(hb < n_hb - 1)
    def _():
        slab_ref[:, PAD_L + (TH + 1) * W:PAD_L + (TH + 2) * W] = pad_rows(
            xb_ref[0, :, 0:W], W)

    # ---- Column masks, built once per step at full shape --------------------
    col = lax.broadcasted_iota(jnp.int32, (CP, THW), 1) % W
    not_left = col != 0          # kw == 0 taps read column w-1: invalid at w == 0
    not_right = col != W - 1     # kw == 2 taps read column w+1: invalid at w == W-1

    # ---- im2col: each shifted tap view is stored exactly once ---------------
    # The +-1 lane-misaligned kw taps are left as slab slices (XLU rotates are
    # free filler here).  The lanes that peek into the uninitialised lane
    # guards are exactly the lanes discarded by the selects below.
    for kh in range(3):
        for kw in range(3):
            off = PAD_L + kh * W + (kw - 1)       # static offset into the slab
            p = slab_ref[:, off:off + THW]        # (CP, TH*W) shifted view
            if kw == 0:
                p = jnp.where(not_left, p, jnp.zeros_like(p))
            elif kw == 2:
                p = jnp.where(not_right, p, jnp.zeros_like(p))
            k = kh * 3 + kw
            patches_ref[k * CP:(k + 1) * CP, :] = p

    # ---- Single K = 9*CP contraction on the MXU; f32 accumulate -------------
    acc = jnp.dot(w_ref[...], patches_ref[...],
                  preferred_element_type=jnp.float32)        # (Co, TH*W)
    o_ref[0, :, :] = acc.astype(o_ref.dtype)


def _pick_tile_h(H, W, est_bytes, *, lane_target=16384, vmem_budget=24 << 20):
    """Largest TILE_H that divides H, is a multiple of 8, keeps TILE_H*W a
    multiple of 128 and stays under the lane / VMEM budgets.  Falls back to a
    single whole-image block when no such tile exists."""
    best = None
    for th in range(8, H + 1, 8):
        if H % th or (th * W) % 128:
            continue
        if best is None:
            best = th                                 # smallest legal tile
        if th * W > lane_target or est_bytes(th) > vmem_budget:
            break
        best = th                                     # largest tile under budget
    return best if best is not None else H


def overlap_patch_embed(x_nchw, weight, *, tile_h=None,
                        compute_dtype=jnp.bfloat16, out_dtype=None):
    """Forward pass of OverlapPatchEmbed (3x3 conv, stride 1, pad 1, no bias).

    x_nchw: (N, C, H, W)   NCHW input
    weight: (Co, C, 3, 3)  Conv2d weight
    compute_dtype: MXU operand dtype (accumulation is always f32)
    out_dtype: output dtype (defaults to the input dtype; pass bf16 to halve
               the HBM writeback, the dominant traffic on v5e)
    returns (N, Co, H, W)
    """
    N, C, H, W = x_nchw.shape
    Co, C_w, KH, KW = weight.shape
    if (C_w, KH, KW) != (C, 3, 3):
        raise ValueError("expected a (Co, C, 3, 3) conv weight")
    out_dtype = x_nchw.dtype if out_dtype is None else out_dtype

    CP = _round_up(C, 8)                   # channels padded to a sublane multiple
    # Left lane guard sized so the centre rows land 128-aligned in the slab.
    PAD_L = 128 - (W % 128) if W % 128 else 128
    in_b = jnp.dtype(x_nchw.dtype).itemsize
    cd_b = jnp.dtype(compute_dtype).itemsize
    out_b = jnp.dtype(out_dtype).itemsize

    def est_bytes(th):
        thw = th * W
        hw = W if W % 128 == 0 else thw
        sw = _round_up(PAD_L + (th + 2) * W + 1, 128)
        return (Co * 9 * CP * cd_b            # resident weight
                + 2 * C * thw * in_b          # centre block (double-buffered)
                + 4 * C * hw * in_b           # two halo blocks (double-buffered)
                + 2 * Co * thw * out_b        # output block (double-buffered)
                + CP * sw * cd_b              # slab scratch
                + 9 * CP * thw * cd_b)        # patches scratch

    TH = _pick_tile_h(H, W, est_bytes) if tile_h is None else tile_h
    if H % TH != 0:
        raise ValueError("tile_h must divide H")
    if TH != H and (TH % 8 != 0 or (TH * W) % 128 != 0):
        raise ValueError("need tile_h % 8 == 0 and (tile_h*W) % 128 == 0")
    THW = TH * W
    n_hb = H // TH
    slab_w = _round_up(PAD_L + (TH + 2) * W + 1, 128)

    # Halo fetch granularity: exactly one row when W is lane-aligned, otherwise
    # fall back to re-fetching the neighbouring TILE_H*W block (tiny-image path).
    if W % 128 == 0:
        halo_w = W
        top_map = lambda n, hb: (n, 0, jnp.maximum(hb * TH - 1, 0))
        bot_map = lambda n, hb: (n, 0, jnp.minimum(hb * TH + TH, H - 1))
    else:
        halo_w = THW
        top_map = lambda n, hb: (n, 0, jnp.maximum(hb - 1, 0))
        bot_map = lambda n, hb: (n, 0, jnp.minimum(hb + 1, n_hb - 1))

    # Free reshape: flatten spatial dims (row-major, no data movement).
    x_flat = x_nchw.reshape(N, C, H * W)
    # One-time weight relayout + cast: (Co, C, 3, 3) -> (Co, 9*CP) so that
    # column (kh*3 + kw)*CP + c matches the im2col operand built in the kernel.
    w_hwc = jnp.transpose(weight, (0, 2, 3, 1))
    w_flat = jnp.pad(w_hwc, ((0, 0), (0, 0), (0, 0), (0, CP - C))).reshape(
        Co, 9 * CP).astype(compute_dtype)

    kernel = functools.partial(_conv3x3_kernel, W=W, TH=TH, PAD_L=PAD_L)

    vmem_limit = int(min(max(3 * est_bytes(TH) // 2 + (4 << 20), 32 << 20),
                         60 << 20))

    out_flat = pl.pallas_call(
        kernel,
        out_shape=jax.ShapeDtypeStruct((N, Co, H * W), out_dtype),
        grid_spec=pltpu.PrefetchScalarGridSpec(
            num_scalar_prefetch=0,
            grid=(N, n_hb),
            in_specs=[
                pl.BlockSpec((Co, 9 * CP), lambda n, hb: (0, 0)),      # weight
                pl.BlockSpec((1, C, THW), lambda n, hb: (n, 0, hb)),   # centre rows
                pl.BlockSpec((1, C, halo_w), top_map),                 # top halo
                pl.BlockSpec((1, C, halo_w), bot_map),                 # bottom halo
            ],
            out_specs=pl.BlockSpec((1, Co, THW), lambda n, hb: (n, 0, hb)),
            scratch_shapes=[pltpu.VMEM((CP, slab_w), compute_dtype),
                            pltpu.VMEM((9 * CP, THW), compute_dtype)],
        ),
        compiler_params=pltpu.CompilerParams(
            dimension_semantics=("parallel", "parallel"),
            vmem_limit_bytes=vmem_limit),
    )(w_flat, x_flat, x_flat, x_flat)

    return out_flat.reshape(N, Co, H, W)


if __name__ == "__main__":
    # Module defaults: in_c=3, embed_dim=48, 3x3 kernel, stride 1, pad 1, no bias.
    in_c, embed_dim = 3, 48
    N, H, W = 2, 16, 16

    key = jax.random.PRNGKey(0)
    kx, kweight = jax.random.split(key)
    x = jax.random.normal(kx, (N, in_c, H, W), dtype=jnp.float32)
    fan_in = in_c * 3 * 3
    weight = jax.random.normal(kweight, (embed_dim, in_c, 3, 3), dtype=jnp.float32)
    weight = weight * (2.0 / fan_in) ** 0.5

    # References with the same semantics as torch.nn.Conv2d.
    conv = functools.partial(
        lax.conv_general_dilated, window_strides=(1, 1),
        padding=((1, 1), (1, 1)), dimension_numbers=("NCHW", "OIHW", "NCHW"),
        precision=lax.Precision.HIGHEST)
    ref_f32 = conv(x, weight)
    # Reference matching the kernel's bf16-operand / f32-accumulate contraction.
    ref_bf16 = conv(x.astype(jnp.bfloat16).astype(jnp.float32),
                    weight.astype(jnp.bfloat16).astype(jnp.float32))

    # Multi-row-block path: exercises the halo BlockSpecs and pl.when edges.
    out = jax.block_until_ready(overlap_patch_embed(x, weight, tile_h=8))
    assert out.shape == (N, embed_dim, H, W)
    assert jnp.allclose(out, ref_bf16, atol=2e-3, rtol=2e-3)
    assert jnp.allclose(out, ref_f32, atol=5e-2, rtol=5e-2)

    # Auto tile-selection path (single row-block at this tiny size).
    out_auto = jax.block_until_ready(overlap_patch_embed(x, weight))
    assert jnp.allclose(out_auto, ref_bf16, atol=2e-3, rtol=2e-3)

    # Full-f32 contraction path for a tighter numerics check.
    out_f32 = jax.block_until_ready(
        overlap_patch_embed(x, weight, tile_h=8, compute_dtype=jnp.float32))
    assert jnp.allclose(out_f32, ref_f32, atol=1e-3, rtol=1e-3)

    print("KERNEL_OK")
</pallas_src>

<mosaic_0001>
module attributes {stable_mosaic.version = 11 : i64} {
  func.func @_conv3x3_kernel(%arg0: i32, %arg1: i32, %arg2: memref<48x72xbf16, #tpu.memory_space<vmem>>, %arg3: memref<1x3x128xf32, #tpu.memory_space<vmem>>, %arg4: memref<1x3x128xf32, #tpu.memory_space<vmem>>, %arg5: memref<1x3x128xf32, #tpu.memory_space<vmem>>, %arg6: memref<1x48x128xf32, #tpu.memory_space<vmem>>, %arg7: memref<8x384xbf16, #tpu.memory_space<vmem>>, %arg8: memref<72x128xbf16, #tpu.memory_space<vmem>>) attributes {dimension_semantics = [#tpu.dimension_semantics<parallel>, #tpu.dimension_semantics<parallel>], iteration_bounds = array<i64: 2, 2>, scalar_prefetch = 0 : i64, scratch_operands = 2 : i64, tpu.core_type = #tpu.core_type<tc>, window_params = [{pipeline_mode = #tpu.pipeline_mode<synchronous>, transform_indices = @transform_0, window_bounds = array<i64: 48, 72>}, {transform_indices = @transform_1, window_bounds = array<i64: 1, 3, 128>}, {transform_indices = @transform_2, window_bounds = array<i64: 1, 3, 128>}, {transform_indices = @transform_3, window_bounds = array<i64: 1, 3, 128>}, {transform_indices = @transform_4, window_bounds = array<i64: 1, 48, 128>}]} {
    %c0 = arith.constant 0 : index
    %c0_0 = arith.constant 0 : index
    %c0_1 = arith.constant 0 : index
    %0 = vector.load %arg3[%c0, %c0_0, %c0_1] : memref<1x3x128xf32, #tpu.memory_space<vmem>>, vector<1x3x128xf32>
    %1 = vector.shape_cast %0 : vector<1x3x128xf32> to vector<3x128xf32>
    %2 = arith.truncf %1 : vector<3x128xf32> to vector<3x128xbf16>
    %cst = arith.constant 0.000000e+00 : bf16
    %3 = vector.broadcast %cst : bf16 to vector<5x128xbf16>
    %4 = tpu.concatenate %2, %3 in 0 : vector<3x128xbf16>, vector<5x128xbf16> -> vector<8x128xbf16>
    %c0_2 = arith.constant 0 : index
    %c128 = arith.constant 128 : index
    %5 = vector.load %arg7[%c0_2, %c128] : memref<8x384xbf16, #tpu.memory_space<vmem>>, vector<8x128xbf16>
    tpu.vector_store %arg7[%c0_2, %c128], %4 {strides = array<i32>} : memref<8x384xbf16, #tpu.memory_space<vmem>>, vector<8x128xbf16>,
    %c0_i32 = arith.constant 0 : i32
    %6 = arith.cmpi eq, %arg1, %c0_i32 : i32
    %7 = arith.extui %6 : i1 to i32
    %c0_i32_3 = arith.constant 0 : i32
    %8 = arith.cmpi ne, %7, %c0_i32_3 : i32
    scf.if %8 {
      %cst_49 = arith.constant 0.000000e+00 : bf16
      %75 = vector.broadcast %cst_49 : bf16 to vector<8x16xbf16>
      %c0_50 = arith.constant 0 : index
      %c112_51 = arith.constant 112 : index
      %76 = vector.load %arg7[%c0_50, %c112_51] : memref<8x384xbf16, #tpu.memory_space<vmem>>, vector<8x16xbf16>
      tpu.vector_store %arg7[%c0_50, %c112_51], %75 {strides = array<i32>} : memref<8x384xbf16, #tpu.memory_space<vmem>>, vector<8x16xbf16>,
    } else {
    }
    %c0_i32_4 = arith.constant 0 : i32
    %9 = arith.cmpi sgt, %arg1, %c0_i32_4 : i32
    %10 = arith.extui %9 : i1 to i32
    %c0_i32_5 = arith.constant 0 : i32
    %11 = arith.cmpi ne, %10, %c0_i32_5 : i32
    scf.if %11 {
      %c0_49 = arith.constant 0 : index
      %c0_50 = arith.constant 0 : index
      %c112_51 = arith.constant 112 : index
      %75 = vector.load %arg4[%c0_49, %c0_50, %c112_51] : memref<1x3x128xf32, #tpu.memory_space<vmem>>, vector<1x3x16xf32>
      %76 = vector.shape_cast %75 : vector<1x3x16xf32> to vector<3x16xf32>
      %77 = arith.truncf %76 : vector<3x16xf32> to vector<3x16xbf16>
      %cst_52 = arith.constant 0.000000e+00 : bf16
      %78 = vector.broadcast %cst_52 : bf16 to vector<5x16xbf16>
      %79 = tpu.concatenate %77, %78 in 0 : vector<3x16xbf16>, vector<5x16xbf16> -> vector<8x16xbf16>
      %c0_53 = arith.constant 0 : index
      %c112_54 = arith.constant 112 : index
      %80 = vector.load %arg7[%c0_53, %c112_54] : memref<8x384xbf16, #tpu.memory_space<vmem>>, vector<8x16xbf16>
      tpu.vector_store %arg7[%c0_53, %c112_54], %79 {strides = array<i32>} : memref<8x384xbf16, #tpu.memory_space<vmem>>, vector<8x16xbf16>,
    } else {
    }
    %c1_i32 = arith.constant 1 : i32
    %12 = arith.cmpi eq, %arg1, %c1_i32 : i32
    %13 = arith.extui %12 : i1 to i32
    %c0_i32_6 = arith.constant 0 : i32
    %14 = arith.cmpi ne, %13, %c0_i32_6 : i32
    scf.if %14 {
      %cst_49 = arith.constant 0.000000e+00 : bf16
      %75 = vector.broadcast %cst_49 : bf16 to vector<8x16xbf16>
      %c0_50 = arith.constant 0 : index
      %c256 = arith.constant 256 : index
      %76 = vector.load %arg7[%c0_50, %c256] : memref<8x384xbf16, #tpu.memory_space<vmem>>, vector<8x16xbf16>
      tpu.vector_store %arg7[%c0_50, %c256], %75 {strides = array<i32>} : memref<8x384xbf16, #tpu.memory_space<vmem>>, vector<8x16xbf16>,
    } else {
    }
    %c1_i32_7 = arith.constant 1 : i32
    %15 = arith.cmpi slt, %arg1, %c1_i32_7 : i32
    %16 = arith.extui %15 : i1 to i32
    %c0_i32_8 = arith.constant 0 : i32
    %17 = arith.cmpi ne, %16, %c0_i32_8 : i32
    scf.if %17 {
      %c0_49 = arith.constant 0 : index
      %c0_50 = arith.constant 0 : index
      %c0_51 = arith.constant 0 : index
      %75 = vector.load %arg5[%c0_49, %c0_50, %c0_51] : memref<1x3x128xf32, #tpu.memory_space<vmem>>, vector<1x3x16xf32>
      %76 = vector.shape_cast %75 : vector<1x3x16xf32> to vector<3x16xf32>
      %77 = arith.truncf %76 : vector<3x16xf32> to vector<3x16xbf16>
      %cst_52 = arith.constant 0.000000e+00 : bf16
      %78 = vector.broadcast %cst_52 : bf16 to vector<5x16xbf16>
      %79 = tpu.concatenate %77, %78 in 0 : vector<3x16xbf16>, vector<5x16xbf16> -> vector<8x16xbf16>
      %c0_53 = arith.constant 0 : index
      %c256 = arith.constant 256 : index
      %80 = vector.load %arg7[%c0_53, %c256] : memref<8x384xbf16, #tpu.memory_space<vmem>>, vector<8x16xbf16>
      tpu.vector_store %arg7[%c0_53, %c256], %79 {strides = array<i32>} : memref<8x384xbf16, #tpu.memory_space<vmem>>, vector<8x16xbf16>,
    } else {
    }
    %18 = tpu.iota {dimensions = array<i32: 1>} : vector<8x128xi32>
    %c16_i32 = arith.constant 16 : i32
    %c0_i32_9 = arith.constant 0 : i32
    %19 = arith.cmpi eq, %c16_i32, %c0_i32_9 : i32
    %c1_i32_10 = arith.constant 1 : i32
    %20 = arith.select %19, %c1_i32_10, %c16_i32 : i32
    %21 = vector.broadcast %20 : i32 to vector<8x128xi32>
    %22 = arith.remsi %18, %21 : vector<8x128xi32>
    %c0_i32_11 = arith.constant 0 : i32
    %23 = vector.broadcast %c0_i32_11 : i32 to vector<8x128xi32>
    %24 = arith.cmpi ne, %22, %23 : vector<8x128xi32>
    %c0_i32_12 = arith.constant 0 : i32
    %25 = vector.broadcast %c0_i32_12 : i32 to vector<8x128xi32>
    %26 = arith.cmpi slt, %22, %25 : vector<8x128xi32>
    %c0_i32_13 = arith.constant 0 : i32
    %27 = arith.cmpi slt, %20, %c0_i32_13 : i32
    %28 = vector.broadcast %27 : i1 to vector<8x128xi1>
    %29 = vector.broadcast %28 : vector<8x128xi1> to vector<8x128xi1>
    %30 = arith.xori %26, %29 : vector<8x128xi1>
    %31 = arith.andi %30, %24 : vector<8x128xi1>
    %32 = vector.broadcast %20 : i32 to vector<8x128xi32>
    %33 = arith.addi %22, %32 : vector<8x128xi32>
    %34 = arith.select %31, %33, %22 : vector<8x128xi1>, vector<8x128xi32>
    %c0_i32_14 = arith.constant 0 : i32
    %35 = vector.broadcast %c0_i32_14 : i32 to vector<8x128xi32>
    %36 = arith.cmpi ne, %34, %35 : vector<8x128xi32>
    %c15_i32 = arith.constant 15 : i32
    %37 = vector.broadcast %c15_i32 : i32 to vector<8x128xi32>
    %38 = arith.cmpi ne, %34, %37 : vector<8x128xi32>
    %c0_15 = arith.constant 0 : index
    %c111 = arith.constant 111 : index
    %39 = vector.load %arg7[%c0_15, %c111] : memref<8x384xbf16, #tpu.memory_space<vmem>>, vector<8x128xbf16>
    %cst_16 = arith.constant 0.000000e+00 : bf16
    %40 = vector.broadcast %cst_16 : bf16 to vector<8x128xbf16>
    %41 = arith.select %36, %39, %40 : vector<8x128xi1>, vector<8x128xbf16>
    %c0_17 = arith.constant 0 : index
    %c0_18 = arith.constant 0 : index
    %42 = vector.load %arg8[%c0_17, %c0_18] : memref<72x128xbf16, #tpu.memory_space<vmem>>, vector<8x128xbf16>
    tpu.vector_store %arg8[%c0_17, %c0_18], %41 {strides = array<i32>} : memref<72x128xbf16, #tpu.memory_space<vmem>>, vector<8x128xbf16>,
    %c0_19 = arith.constant 0 : index
    %c112 = arith.constant 112 : index
    %43 = vector.load %arg7[%c0_19, %c112] : memref<8x384xbf16, #tpu.memory_space<vmem>>, vector<8x128xbf16>
    %c8 = arith.constant 8 : index
    %c0_20 = arith.constant 0 : index
    %44 = vector.load %arg8[%c8, %c0_20] : memref<72x128xbf16, #tpu.memory_space<vmem>>, vector<8x128xbf16>
    tpu.vector_store %arg8[%c8, %c0_20], %43 {strides = array<i32>} : memref<72x128xbf16, #tpu.memory_space<vmem>>, vector<8x128xbf16>,
    %c0_21 = arith.constant 0 : index
    %c113 = arith.constant 113 : index
    %45 = vector.load %arg7[%c0_21, %c113] : memref<8x384xbf16, #tpu.memory_space<vmem>>, vector<8x128xbf16>
    %cst_22 = arith.constant 0.000000e+00 : bf16
    %46 = vector.broadcast %cst_22 : bf16 to vector<8x128xbf16>
    %47 = arith.select %38, %45, %46 : vector<8x128xi1>, vector<8x128xbf16>
    %c16 = arith.constant 16 : index
    %c0_23 = arith.constant 0 : index
    %48 = vector.load %arg8[%c16, %c0_23] : memref<72x128xbf16, #tpu.memory_space<vmem>>, vector<8x128xbf16>
    tpu.vector_store %arg8[%c16, %c0_23], %47 {strides = array<i32>} : memref<72x128xbf16, #tpu.memory_space<vmem>>, vector<8x128xbf16>,
    %c0_24 = arith.constant 0 : index
    %c127 = arith.constant 127 : index
    %49 = vector.load %arg7[%c0_24, %c127] : memref<8x384xbf16, #tpu.memory_space<vmem>>, vector<8x128xbf16>
    %cst_25 = arith.constant 0.000000e+00 : bf16
    %50 = vector.broadcast %cst_25 : bf16 to vector<8x128xbf16>
    %51 = arith.select %36, %49, %50 : vector<8x128xi1>, vector<8x128xbf16>
    %c24 = arith.constant 24 : index
    %c0_26 = arith.constant 0 : index
    %52 = vector.load %arg8[%c24, %c0_26] : memref<72x128xbf16, #tpu.memory_space<vmem>>, vector<8x128xbf16>
    tpu.vector_store %arg8[%c24, %c0_26], %51 {strides = array<i32>} : memref<72x128xbf16, #tpu.memory_space<vmem>>, vector<8x128xbf16>,
    %c0_27 = arith.constant 0 : index
    %c128_28 = arith.constant 128 : index
    %53 = vector.load %arg7[%c0_27, %c128_28] : memref<8x384xbf16, #tpu.memory_space<vmem>>, vector<8x128xbf16>
    %c32 = arith.constant 32 : index
    %c0_29 = arith.constant 0 : index
    %54 = vector.load %arg8[%c32, %c0_29] : memref<72x128xbf16, #tpu.memory_space<vmem>>, vector<8x128xbf16>
    tpu.vector_store %arg8[%c32, %c0_29], %53 {strides = array<i32>} : memref<72x128xbf16, #tpu.memory_space<vmem>>, vector<8x128xbf16>,
    %c0_30 = arith.constant 0 : index
    %c129 = arith.constant 129 : index
    %55 = vector.load %arg7[%c0_30, %c129] : memref<8x384xbf16, #tpu.memory_space<vmem>>, vector<8x128xbf16>
    %cst_31 = arith.constant 0.000000e+00 : bf16
    %56 = vector.broadcast %cst_31 : bf16 to vector<8x128xbf16>
    %57 = arith.select %38, %55, %56 : vector<8x128xi1>, vector<8x128xbf16>
    %c40 = arith.constant 40 : index
    %c0_32 = arith.constant 0 : index
    %58 = vector.load %arg8[%c40, %c0_32] : memref<72x128xbf16, #tpu.memory_space<vmem>>, vector<8x128xbf16>
    tpu.vector_store %arg8[%c40, %c0_32], %57 {strides = array<i32>} : memref<72x128xbf16, #tpu.memory_space<vmem>>, vector<8x128xbf16>,
    %c0_33 = arith.constant 0 : index
    %c143 = arith.constant 143 : index
    %59 = vector.load %arg7[%c0_33, %c143] : memref<8x384xbf16, #tpu.memory_space<vmem>>, vector<8x128xbf16>
    %cst_34 = arith.constant 0.000000e+00 : bf16
    %60 = vector.broadcast %cst_34 : bf16 to vector<8x128xbf16>
    %61 = arith.select %36, %59, %60 : vector<8x128xi1>, vector<8x128xbf16>
    %c48 = arith.constant 48 : index
    %c0_35 = arith.constant 0 : index
    %62 = vector.load %arg8[%c48, %c0_35] : memref<72x128xbf16, #tpu.memory_space<vmem>>, vector<8x128xbf16>
    tpu.vector_store %arg8[%c48, %c0_35], %61 {strides = array<i32>} : memref<72x128xbf16, #tpu.memory_space<vmem>>, vector<8x128xbf16>,
    %c0_36 = arith.constant 0 : index
    %c144 = arith.constant 144 : index
    %63 = vector.load %arg7[%c0_36, %c144] : memref<8x384xbf16, #tpu.memory_space<vmem>>, vector<8x128xbf16>
    %c56 = arith.constant 56 : index
    %c0_37 = arith.constant 0 : index
    %64 = vector.load %arg8[%c56, %c0_37] : memref<72x128xbf16, #tpu.memory_space<vmem>>, vector<8x128xbf16>
    tpu.vector_store %arg8[%c56, %c0_37], %63 {strides = array<i32>} : memref<72x128xbf16, #tpu.memory_space<vmem>>, vector<8x128xbf16>,
    %c0_38 = arith.constant 0 : index
    %c145 = arith.constant 145 : index
    %65 = vector.load %arg7[%c0_38, %c145] : memref<8x384xbf16, #tpu.memory_space<vmem>>, vector<8x128xbf16>
    %cst_39 = arith.constant 0.000000e+00 : bf16
    %66 = vector.broadcast %cst_39 : bf16 to vector<8x128xbf16>
    %67 = arith.select %38, %65, %66 : vector<8x128xi1>, vector<8x128xbf16>
    %c64 = arith.constant 64 : index
    %c0_40 = arith.constant 0 : index
    %68 = vector.load %arg8[%c64, %c0_40] : memref<72x128xbf16, #tpu.memory_space<vmem>>, vector<8x128xbf16>
    tpu.vector_store %arg8[%c64, %c0_40], %67 {strides = array<i32>} : memref<72x128xbf16, #tpu.memory_space<vmem>>, vector<8x128xbf16>,
    %c0_41 = arith.constant 0 : index
    %c0_42 = arith.constant 0 : index
    %69 = vector.load %arg2[%c0_41, %c0_42] : memref<48x72xbf16, #tpu.memory_space<vmem>>, vector<48x72xbf16>
    %c0_43 = arith.constant 0 : index
    %c0_44 = arith.constant 0 : index
    %70 = vector.load %arg8[%c0_43, %c0_44] : memref<72x128xbf16, #tpu.memory_space<vmem>>, vector<72x128xbf16>
    %cst_45 = arith.constant dense<0.000000e+00> : vector<48x128xf32>
    %71 = tpu.matmul %69, %70, %cst_45 {dimension_numbers = #tpu.dot_dimension_numbers<[1], [0], [0], [1], [0, 0, 1, 1], [], []>} : vector<48x72xbf16>, vector<72x128xbf16>, vector<48x128xf32> -> vector<48x128xf32>
    %c0_46 = arith.constant 0 : index
    %c0_47 = arith.constant 0 : index
    %c0_48 = arith.constant 0 : index
    %72 = vector.load %arg6[%c0_46, %c0_47, %c0_48] : memref<1x48x128xf32, #tpu.memory_space<vmem>>, vector<1x48x128xf32>
    %73 = vector.shape_cast %72 : vector<1x48x128xf32> to vector<48x128xf32>
    %74 = vector.shape_cast %71 : vector<48x128xf32> to vector<1x48x128xf32>
    tpu.vector_store %arg6[%c0_46, %c0_47, %c0_48], %74 {strides = array<i32>} : memref<1x48x128xf32, #tpu.memory_space<vmem>>, vector<1x48x128xf32>,
    return
  }
  func.func @transform_0(%arg0: i32, %arg1: i32) -> (i32, i32) {
    %c0_i32 = arith.constant 0 : i32
    %c0_i32_0 = arith.constant 0 : i32
    %c0_i32_1 = arith.constant 0 : i32
    return %c0_i32, %c0_i32_0 : i32, i32
  }
  func.func @transform_1(%arg0: i32, %arg1: i32) -> (i32, i32, i32) {
    %c0_i32 = arith.constant 0 : i32
    %c0_i32_0 = arith.constant 0 : i32
    return %arg0, %c0_i32, %arg1 : i32, i32, i32
  }
  func.func @transform_2(%arg0: i32, %arg1: i32) -> (i32, i32, i32) {
    %c1_i32 = arith.constant 1 : i32
    %0 = arith.subi %arg1, %c1_i32 : i32
    %c0_i32 = arith.constant 0 : i32
    %1 = arith.maxsi %0, %c0_i32 : i32
    %c0_i32_0 = arith.constant 0 : i32
    %c0_i32_1 = arith.constant 0 : i32
    return %arg0, %c0_i32_0, %1 : i32, i32, i32
  }
  func.func @transform_3(%arg0: i32, %arg1: i32) -> (i32, i32, i32) {
    %c1_i32 = arith.constant 1 : i32
    %0 = arith.addi %arg1, %c1_i32 : i32
    %c1_i32_0 = arith.constant 1 : i32
    %1 = arith.minsi %0, %c1_i32_0 : i32
    %c0_i32 = arith.constant 0 : i32
    %c0_i32_1 = arith.constant 0 : i32
    return %arg0, %c0_i32, %1 : i32, i32, i32
  }
  func.func @transform_4(%arg0: i32, %arg1: i32) -> (i32, i32, i32) {
    %c0_i32 = arith.constant 0 : i32
    %c0_i32_0 = arith.constant 0 : i32
    return %arg0, %c0_i32, %arg1 : i32, i32, i32
  }
}

</mosaic_0001>

<bundles_post_ra>
// kernel: tpu_custom_call.1
= control target key start
LH: loop header
LB: loop body
LE: loop exit
PB: predicated region body
PF: predicated region fallthrough
CT: control target
= control target key end

     0   :  { %s1258_s0 = inlined_call_operand.vmem [shape: bf16[48,72], index: 0, kind: input, shape index: {}]   ;;  %s1259_s1 = inlined_call_operand.vmem [shape: f32[2,3,256], index: 1, kind: input, shape index: {}]   ;;  %s1260_s2 = inlined_call_operand.vmem [shape: f32[2,3,256], index: 2, kind: input, shape index: {}]   ;;  %s1261_s3 = inlined_call_operand.vmem [shape: f32[2,3,256], index: 3, kind: input, shape index: {}]   ;;  %s1262_s4 = inlined_call_operand.hbm [shape: f32[2,48,256], index: 4, kind: output, shape index: {}]  }
   0x1   :  { %1267 = sst [smem:[#allocation8_spill]] %s1259_s1 }
   0x2   :  { %9 = vsyncpa [#allocation5], 0 }
   0x3   :  { %11 = vsyncpa [#allocation5 + $0x1], 0  ;;  %s1067_s15 = smov 0   ;;  %s1069_s16 = smov 0  }
   0x4   :  { %s1071_s17 = smov 0   ;;  %s1073_s18 = smov 0  }
   0x5   :  { %s1075_s19 = smov 0   ;;  %s1077_s20 = smov 0  }
   0x6   :  { %s1079_s21 = smov 0   ;;  %s1081_s22 = smov 0  }
   0x7 LB: > { %s766_s23 = sadd.s32 4294967295, %s1026_s22   ;;  %s767_s24 = sadd.s32 4294967294, %s1026_s22   ;;  %s1026_s22 = sphi %s1081_s22, %s17_s22   ;;  %s1022_s21 = sphi %s1079_s21, %s1284_s21   ;;  %s1018_s20 = sphi %s1077_s20, %s1283_s20   ;;  %s1014_s19 = sphi %s1075_s19, %s1282_s19   ;;  %s1010_s18 = sphi %s1073_s18, %s1281_s18   ;;  %s1006_s17 = sphi %s1071_s17, %s1280_s17   ;;  %s1002_s16 = sphi %s1069_s16, %s1279_s16   ;;  %s998_s15 = sphi %s1067_s15, %s1278_s15  }
   0x8   : > { %s26_s25 = sadd.s32 1, %s1018_s20  ;;  %s29_s26 = sadd.s32 1, %s1022_s21 }
   0x9   : > { %p27_p0 = scmp.ge.s32.totalorder %s26_s25, 2  ;;  %p165_p1 = scmp.ne.s32.totalorder %s1006_s17, %s1002_s16 }
   0xa   : > { %p166_p2 = scmp.eq.s32.totalorder %s766_s23, 3  ;;  %p171_p5 = scmp.ne.s32.totalorder %s1002_s16, %s998_s15 }
   0xb   : > { %s1286_s25 = smov (%p27_p0, %s26_s25), 0  ;;  %s1288_s26 = smov (!%p27_p0, %s29_s26), %s1022_s21 }
   0xc   : > { %s151_s27 = ssub.s32 %s1018_s20, %s1286_s25  ;;  %p1118_p3 = por %p166_p2, %p165_p1 }
   0xd   : > { %p31_p4 = scmp.ge.s32.totalorder %s1288_s26, 2  ;;  %p172_p6 = scmp.eq.s32.totalorder %s767_s24, 3 }
   0xe   : > { %p772_p7 = scmp.ge.s32.totalorder %s1026_s22, 1  ;;  %p238_p9 = scmp.lt.s32.totalorder %s1026_s22, 5 }
   0xf   : > { %s1290_s26 = smov (%p31_p4, %s1288_s26), 0  ;;  %p1127_p8 = por %p172_p6, %p171_p5 }
  0x10   : > { %1269 = sst [smem:[#allocation7_spill]] %s1290_s26  ;;  %s150_s30 = ssub.s32 %s1022_s21, %s1290_s26 }
  0x11   : > { %s155_s5 = sadd.s32 1, %s1006_s17  ;;  %s152_s6 = sor.u32 %s151_s27, %s150_s30 }
  0x12   : > { %p239_p10 = pnand %p772_p7, %p238_p9  ;;  %p153_p11 = scmp.eq.s32.totalorder %s152_s6, 0 }
  0x13   : > { %s1263_s8 = sand.u32 (!%p239_p10), 1, %s1002_s16   ;;  %p289_p12 = scmp.lt.s32.totalorder (!%p239_p10), %s1014_s19, 1 }
  0x14   : > { %s1136_s7 = scalar_select %p153_p11, %s1006_s17, %s155_s5  }
  0x15   : > { %242 = sbr.rel (%p239_p10) target bundleno = 508 (0x1fc), region = 36  ;;  %p291_p13 = scmp.lt.s32.totalorder (!%p239_p10), %s1010_s18, 1 }
  0x16   : > { %s1142_s9 = smul.u32 (!%p239_p10), 48, %s1263_s8  ;;  %s775_s11 = sadd.s32 (!%p239_p10), 4294967295, %s1010_s18 }
  0x17   : > { %p298_p0 = scmp.gt.s32.totalorder (!%p239_p10), %s775_s11, 0  ;;  %p776_p1 = scmp.lt.s32.totalorder (!%p239_p10), %s775_s11, 1 }
  0x18   : > { %s311_s24 = sadd.s32 (!%p239_p10), 1, %s1010_s18  ;;  %s1271_s1 = sld [smem:[#allocation8_spill]] (!%p239_p10) }
  0x19   : > { %p312_p2 = scmp.lt.s32.totalorder (!%p239_p10), %s311_s24, 1  ;;  %s1165_s26 = scalar_lea.vmem (!%p239_p10), [#allocation4], %s1142_s9 }
  0x1a   : > { %s290_s10 = scalar_select %p289_p12, %s1014_s19, 1  ;;  %vm330_vm0 = vcmask 1041408   ;;  %vm331_vm1 = vsmask.f32 1280 }
  0x1b   : > { %s292_s12 = scalar_select %p291_p13, %s1010_s18, 1  ;;  %vm1152_vm2 = vmand %vm330_vm0, %vm331_vm1 }
  0x1c   : > { %s773_s13 = sshll.u32 %s290_s10, 1  ;;  %s1292_s11 = smov (!%p298_p0, %s775_s11), 0 }
  0x1d   : > { %s294_s14 = sadd.s32 %s773_s13, %s292_s12  ;;  %s1294_s24 = smov (!%p312_p2, %s311_s24), 1 }
  0x1e   : > { %s774_s23 = sshll.u32 %s294_s14, 2  ;;  %s1296_s11 = smov (!%p776_p1, %s1292_s11), 1 }
  0x1f   : > { %s296_s5 = scalar_lea.vmem %s1271_s1, %s774_s23  ;;  %s1298_s24 = smov (!%p312_p2, %s1294_s24), 1 }
  0x20   : > { %v328_v0 = vld [vmem:[%s296_s5] sm:$0x7]  ;;  %s305_s6 = sadd.s32 %s1296_s11, %s773_s13  ;;  %s319_s12 = sadd.s32 %s773_s13, %s1298_s24 }
  0x21   : > { %v329_v2 = vpack.c.bf16 %v328_v0, %v328_v0  ;;  %s782_s10 = sshll.u32 %s305_s6, 2  ;;  %s787_s30 = sshll.u32 %s319_s12, 2 }
  0x22   : > { %s307_s27 = scalar_lea.vmem %s1260_s2, %s782_s10  ;;  %s321_s1 = scalar_lea.vmem %s1261_s3, %s787_s30 }
  0x23   : > { %v333_v3 = vsel %vm1152_vm2, %v329_v2, 0  ;;  %p788_p4 = scmp.ne.s32.totalorder %s1010_s18, 0 }
  0x24   : > { %334 = vst [vmem:[#allocation2 + $0x4] sm:$0xf] %v333_v3 }
  0x25   : > { %338 = sbr.rel (%p788_p4) target bundleno = 44 (0x2c), region = 40 }
  0x2a   : > { %vm339_vm3 = vcmask 1044352   ;;  %v1028_v4 = vmov 0  }
  0x2b   : > { %340 = vst.msk [vmem:[#allocation2] sm:$0xf] %vm339_vm3, %v1028_v4 }
  0x2c PF: > { %p789_p5 = scmp.le.s32.totalorder %s1010_s18, 0 }
  0x2e   : > { %344 = sbr.rel (%p789_p5) target bundleno = 56 (0x38), region = 44 }
  0x33   : > { %v345_v5 = vld [vmem:[%s307_s27] sm:$0x7]  ;;  %vm348_vm4 = vcmask 1044352  }
  0x34   : > { %v346_v6 = vpack.c.bf16 %v345_v5, %v345_v5 }
  0x36   : > { %v347_v7 = vsel %vm1152_vm2, %v346_v6, 0 }
  0x37   : > { %349 = vst.msk [vmem:[#allocation2] sm:$0xf] %vm348_vm4, %v347_v7 }
  0x38 PF: > { %p790_p6 = scmp.ne.s32.totalorder %s1010_s18, 1 }
  0x3a   : > { %353 = sbr.rel (%p790_p6) target bundleno = 65 (0x41), region = 48 }
  0x3f   : > { %vm354_vm5 = vcmask 125952   ;;  %v1029_v8 = vmov 0  }
  0x40   : > { %355 = vst.msk [vmem:[#allocation2 + $0x8] sm:$0xf] %vm354_vm5, %v1029_v8 }
  0x41 PF: > { %p791_p7 = scmp.ge.s32.totalorder %s1010_s18, 1 }
  0x43   : > { %359 = sbr.rel (%p791_p7) target bundleno = 77 (0x4d), region = 52 }
  0x48   : > { %v360_v9 = vld [vmem:[%s321_s1] sm:$0x7]  ;;  %vm363_vm6 = vcmask 125952  }
  0x49   : > { %v361_v10 = vpack.c.bf16 %v360_v9, %v360_v9 }
  0x4b   : > { %v362_v11 = vsel %vm1152_vm2, %v361_v10, 0 }
  0x4c   : > { %364 = vst.msk [vmem:[#allocation2 + $0x8] sm:$0xf] %vm363_vm6, %v362_v11 }
  0x4d PF: > { %v365_v12 = vlaneseq  ;;  %v1030_v15 = vmov 0   ;;  %s1031_s8 = smov 17   ;;  %s1032_s1 = smov 1   ;;  %vm442_vm11 = vcmask 1039360   ;;  %v438_v26 = vld [vmem:[#allocation2] sm:$0xff]  ;;  %vm1265_vm15 = vcmask 138240  }
  0x4e   : > { %s1033_s9 = smov 127   ;;  %s1034_s11 = smov 15   ;;  %v391_v22 = vunpack.c.l.b16 %v1030_v15  ;;  %v392_v23 = vunpack.c.h.b16 %v1030_v15  ;;  %vm456_vm0 = vcmask 7168   ;;  %vm387_vm1 = vcmask 908288   ;;  %v460_v0 = vld [vmem:[#allocation2 + $0x4] sm:$0xf] }
  0x4f   : > { %v366_v13 = vand.u32 127, %v365_v12  ;;  %s1035_s13 = smov 113   ;;  %s1036_s24 = smov 111   ;;  %vm1266_vm5 = vcmask 121856   ;;  %vm420_vm6 = vcmask 924672  }
  0x50   : > { %s1037_s6 = smov 112   ;;  %s1038_s10 = smov 16   ;;  %461 = vst [vmem:[#allocation3 + $0x10] sm:$0xf] %v460_v0 }
  0x51   : > { %v371_v14 = vand.u32 15, %v366_v13  ;;  %s952_s30 = scalar_lea.hbm %s1262_s4, 192 }
  0x53   : > { %vm380_vm7 = vcmp.ne.s32.totalorder %v371_v14, 15  ;;  %vm379_vm8 = vcmp.ne.s32.totalorder %v371_v14, 0  ;;  %v511_v18 = vld [vmem:[#allocation2 + $0x4] sm:$0xff] }
  0x54   : > { %vm415_vm9 = vmpackc.low %vm380_vm7, %vm380_vm7 }
  0x55   : > { %v416_v16 = vsel %vm415_vm9, 65537, %v1030_v15  ;;  %vm382_vm10 = vmpackc.low %vm379_vm8, %vm379_vm8 }
  0x56   : > { %512 = vrot.lane.b32.xlu0 %v416_v16, %s1031_s8  ;;  %463 = vrot.lane.b32.xlu1 %v416_v16, %s1032_s1  ;;  %v383_v17 = vsel %vm382_vm10, 65537, %v1030_v15 }
  0x57   : > { %439 = vrot.lane.b32.xlu2 %v383_v17, %s1033_s9 }
  0x5e   : > { %483 = vrot.lane.b32.xlu0 %v383_v17, %s1034_s11  ;;  %417 = vrot.lane.b32.xlu1 %v416_v16, %s1035_s13 }
  0x5f   : > { %384 = vrot.lane.b32.xlu2 %v383_v17, %s1036_s24 }
  0x67   : > { %504 = vrot.lane.b32.xlu2 %v511_v18, %s1037_s6  ;;  %s646_s6 = sshll.u32 %s1165_s26, 4  ;;  %s647_s6 = int_to_ptr.vmem [resolvable:$true] %s646_s6 }
  0xb1   : > { %v440_v19 = vpop.permute.xlu2 %439 }
  0xb2   : > { %v441_v20 = vrot.slane %v440_v19, 4 }
  0xb4   : > { %v443_v21 = vsel %vm442_vm11, %v441_v20, %v440_v19 }
  0xb5   : > { %v444_v24 = vunpack.c.l.b16 %v443_v21  ;;  %v445_v25 = vunpack.c.h.b16 %v443_v21 }
  0xb7   : > { %vm448_vm12 = vcmp.ne.s32.totalorder %v444_v24, %v391_v22  ;;  %vm449_vm13 = vcmp.ne.s32.totalorder %v445_v25, %v392_v23 }
  0xb8   : > { %vm450_vm14 = vmpackc.low %vm449_vm13, %vm448_vm12 }
  0xb9   : > { %v451_v27 = vsel %vm450_vm14, %v438_v26, 0  ;;  %v385_v32 = vpop.permute.xlu2 %384 }
  0xba   : > { %453 = vrot.lane.b32.xlu2 %v451_v27, %s1032_s1  ;;  %v386_v37 = vrot.slane %v385_v32, 4  ;;  %v828_v27 = vld [vmem:[%s1258_s0] sm:$0xff] }
  0xbc   : > { %v388_v45 = vsel %vm387_vm1, %v386_v37, %v385_v32 }
  0xbd   : > { %v389_v50 = vunpack.c.l.b16 %v388_v45  ;;  %v390_v51 = vunpack.c.h.b16 %v388_v45 }
  0xbf   : > { %vm393_vm14 = vcmp.ne.s32.totalorder %v389_v50, %v391_v22 }
  0xc1   : > { %v505_v58 = vpop.permute.xlu2 %504 }
  0xc2   : > { %v506_v59 = vrot.slane %v505_v58, 4 }
  0xc8   : > { %v513_v28 = vpop.permute.xlu0 %512  ;;  %v464_v29 = vpop.permute.xlu1 %463 }
  0xc9   : > { %v514_v30 = vrot.slane %v513_v28, 4  ;;  %v465_v31 = vrot.slane %v464_v29, 4 }
  0xcb   : > { %v515_v33 = vsel %vm1265_vm15, %v514_v30, %v513_v28  ;;  %v466_v34 = vsel %vm456_vm0, %v465_v31, %v464_v29  ;;  %v829_v28 = vld [vmem:[%s1258_s0 + $0x8] sm:$0xff]  ;;  %v830_v29 = vld [vmem:[%s1258_s0 + $0x10] sm:$0xff] }
  0xcc   : > { %v516_v35 = vunpack.c.l.b16 %v515_v33  ;;  %v517_v36 = vunpack.c.h.b16 %v515_v33  ;;  %v467_v38 = vunpack.c.l.b16 %v466_v34  ;;  %v468_v39 = vunpack.c.h.b16 %v466_v34 }
  0xce   : > { %vm520_vm2 = vcmp.ne.s32.totalorder %v516_v35, %v391_v22  ;;  %vm521_vm3 = vcmp.ne.s32.totalorder %v517_v36, %v392_v23  ;;  %vm471_vm7 = vcmp.ne.s32.totalorder %v467_v38, %v391_v22  ;;  %vm472_vm8 = vcmp.ne.s32.totalorder %v468_v39, %v392_v23 }
  0xcf   : > { %vm522_vm4 = vmpackc.low %vm521_vm3, %vm520_vm2  ;;  %vm394_vm2 = vcmp.ne.s32.totalorder %v390_v51, %v392_v23 }
  0xd0   : > { %v484_v40 = vpop.permute.xlu0 %483  ;;  %v523_v41 = vsel %vm522_vm4, %v511_v18, 0  ;;  %v418_v42 = vpop.permute.xlu1 %417  ;;  %vm473_vm9 = vmpackc.low %vm472_vm8, %vm471_vm7  ;;  %vm507_vm7 = vcmask 916480  }
  0xd1   : > { %v485_v43 = vrot.slane %v484_v40, 4  ;;  %525 = vrot.lane.b32.xlu0 %v523_v41, %s1036_s24  ;;  %v419_v44 = vrot.slane %v418_v42, 4  ;;  %v474_v54 = vsel %vm473_vm9, %v511_v18, 0  ;;  %vm395_vm15 = vmpackc.low %vm394_vm2, %vm393_vm14  ;;  %v508_v60 = vsel %vm507_vm7, %v505_v58, %v506_v59 }
  0xd2   : > { %v396_v56 = vsel %vm395_vm15, %v438_v26, 0  ;;  %510 = vst [vmem:[#allocation3 + $0x1c] sm:$0xf] %v508_v60  ;;  %vm598_vm15 = vcmask 1043456  }
  0xd3   : > { %v486_v46 = vsel %vm1266_vm5, %v485_v43, %v484_v40  ;;  %v421_v47 = vsel %vm420_vm6, %v419_v44, %v418_v42 }
  0xd4   : > { %v487_v48 = vunpack.c.l.b16 %v486_v46  ;;  %v488_v49 = vunpack.c.h.b16 %v486_v46  ;;  %v422_v52 = vunpack.c.l.b16 %v421_v47  ;;  %v423_v53 = vunpack.c.h.b16 %v421_v47 }
  0xd6   : > { %vm491_vm10 = vcmp.ne.s32.totalorder %v487_v48, %v391_v22  ;;  %vm492_vm12 = vcmp.ne.s32.totalorder %v488_v49, %v392_v23  ;;  %vm426_vm3 = vcmp.ne.s32.totalorder %v422_v52, %v391_v22  ;;  %vm427_vm4 = vcmp.ne.s32.totalorder %v423_v53, %v392_v23 }
  0xd7   : > { %vm493_vm13 = vmpackc.low %vm492_vm12, %vm491_vm10 }
  0xd8   : > { %v494_v55 = vsel %vm493_vm13, %v511_v18, 0  ;;  %vm428_vm5 = vmpackc.low %vm427_vm4, %vm426_vm3 }
  0xd9   : > { %476 = vrot.lane.b32.xlu0 %v474_v54, %s1033_s9  ;;  %496 = vrot.lane.b32.xlu1 %v494_v55, %s1035_s13  ;;  %v429_v57 = vsel %vm428_vm5, %v438_v26, 0  ;;  %vm588_vm5 = vcmask 588800  }
  0xe1   : > { %431 = vrot.lane.b32.xlu1 %v429_v57, %s1034_s11  ;;  %398 = vrot.lane.b32.xlu0 %v396_v56, %s1031_s8  ;;  %s846_s8 = smul.u32 12, %s1014_s19 }
  0xe3   : > { %s643_s1 = sadd.s32 %s1010_s18, %s846_s8  ;;  %s1276_s18 = sand.u32 1, %s1002_s16  }
  0xe4   : > { %s823_s9 = sshll.u32 %s643_s1, 3 }
  0xe5   : > { %s645_s24 = scalar_lea.hbm %s1262_s4, %s823_s9 }
  0xe6   : > { %s648_s19 = sshll.u32 %s645_s24, 4  ;;  %s649_s19 = int_to_ptr.hbm [resolvable:$true] %s648_s19 }
  0xe7   : > { %s946_s12 = sshra.s32 %s649_s19, 4  ;;  %s947_s12 = int_to_ptr.hbm [resolvable:$true] %s946_s12 }
  0xe8   : > { %s948_s14 = scalar_lea.hbm %s947_s12, 48  ;;  %p953_p12 = scmp.lt.s32.totalorder %s947_s12, %s1262_s4 }
  0xe9   : > { %407 = vrot.lane.b32.xlu1 %v438_v26, %s1038_s10  ;;  %s633_s10 = scalar_lea.sflag [#allocation5], %s1276_s18  ;;  %p949_p9 = scmp.ne.s32.totalorder %s947_s12, %s948_s14 }
  0xea   : > { %p954_p13 = scmp.lt.s32.totalorder %s952_s30, %s948_s14 }
  0xeb   : > { %p950_p10 = pnand %p949_p9, %p1118_p3 }
  0xec   : > { %p955_p0 = por %p954_p13, %p953_p12 }
  0xed   : > { %p951_p11 = pneg %p950_p10 }
  0xef   : > { %p956_p1 = pnand %p955_p0, %p951_p11 }
 0x114   : > { %v454_v61 = vpop.permute.xlu2 %453 }
 0x115   : > { %v455_v62 = vrot.slane %v454_v61, 4 }
 0x117   : > { %v457_v63 = vsel %vm456_vm0, %v454_v61, %v455_v62  ;;  %vm1274_vm0 = vcmask 121856  }
 0x118   : > { %459 = vst [vmem:[#allocation3 + $0xc] sm:$0xf] %v457_v63 }
 0x143   : > { %v526_v1 = vpop.permute.xlu0 %525 }
 0x144   : > { %v527_v2 = vrot.slane %v526_v1, 4 }
 0x146   : > { %v528_v3 = vsel %vm387_vm1, %v526_v1, %v527_v2  ;;  %vm1275_vm1 = vcmask 138240  }
 0x147   : > { %530 = vst [vmem:[#allocation3 + $0x20] sm:$0xf] %v528_v3 }
 0x14b   : > { %v497_v4 = vpop.permute.xlu1 %496  ;;  %v477_v5 = vpop.permute.xlu0 %476 }
 0x14c   : > { %v498_v6 = vrot.slane %v497_v4, 4  ;;  %v478_v7 = vrot.slane %v477_v5, 4 }
 0x14e   : > { %v499_v8 = vsel %vm420_vm6, %v497_v4, %v498_v6  ;;  %v479_v9 = vsel %vm442_vm11, %v477_v5, %v478_v7  ;;  %v545_v10 = vld [vmem:[#allocation3 + $0x20] sm:$0xf]  ;;  %vm410_vm11 = vcmask 130048  }
 0x14f   : > { %501 = vst [vmem:[#allocation3 + $0x18] sm:$0xf] %v499_v8  ;;  %v578_v11 = vunpack.c.l.b16 %v545_v10 }
 0x150   : > { %481 = vst [vmem:[#allocation3 + $0x14] sm:$0xf] %v479_v9 }
 0x151   : > { %v583_v12 = vpack.c.b16 %v578_v11, %v578_v11 }
 0x153   : > { %v432_v13 = vpop.permute.xlu1 %431  ;;  %v600_v14 = vsel %vm598_vm15, %v583_v12, 0  ;;  %v399_v15 = vpop.permute.xlu0 %398 }
 0x154   : > { %v433_v16 = vrot.slane %v432_v13, 4  ;;  %605 = vmatpush.bf16.msra.mxu0 %v600_v14  ;;  %835 = vmatpush.bf16.msra.mxu1 %v600_v14  ;;  %v400_v17 = vrot.slane %v399_v15, 4 }
 0x155   : > { %836 = vmatpush.bf16.msra.mxu2 %v600_v14 }
 0x156   : > { %v435_v18 = vsel %vm1274_vm0, %v432_v13, %v433_v16  ;;  %v402_v19 = vsel %vm1275_vm1, %v399_v15, %v400_v17  ;;  %v834_v20 = vld [vmem:[#allocation3 + $0x18] sm:$0xff] }
 0x157   : > { %437 = vst [vmem:[#allocation3 + $0x8] sm:$0xf] %v435_v18  ;;  %v833_v21 = vld [vmem:[#allocation3 + $0x10] sm:$0xff] }
 0x158   : > { %404 = vst [vmem:[#allocation3] sm:$0xf] %v402_v19  ;;  %606 = vmatpush.bf16.msra.mxu0 %v834_v20  ;;  %837 = vmatpush.bf16.msra.mxu1 %v834_v20 }
 0x159   : > { %838 = vmatpush.bf16.msra.mxu2 %v834_v20 }
 0x15b   : > { %v408_v22 = vpop.permute.xlu1 %407 }
 0x15c   : > { %v409_v23 = vrot.slane %v408_v22, 4  ;;  %607 = vmatpush.bf16.msra.mxu0 %v833_v21  ;;  %839 = vmatpush.bf16.msra.mxu1 %v833_v21 }
 0x15d   : > { %840 = vmatpush.bf16.msra.mxu2 %v833_v21 }
 0x15e   : > { %v411_v24 = vsel %vm410_vm11, %v408_v22, %v409_v23  ;;  %v832_v25 = vld [vmem:[#allocation3 + $0x8] sm:$0xff] }
 0x15f   : > { %413 = vst [vmem:[#allocation3 + $0x4] sm:$0xf] %v411_v24 }
 0x160   : > { %608 = vmatpush.bf16.msra.mxu0 %v832_v25  ;;  %841 = vmatpush.bf16.msra.mxu1 %v832_v25 }
 0x161   : > { %842 = vmatpush.bf16.msra.mxu2 %v832_v25 }
 0x166   : > { %v831_v26 = vld [vmem:[#allocation3] sm:$0xff] }
 0x167   : > { %609 = vmatpush.bf16.msra.mxu0 %v831_v26  ;;  %843 = vmatpush.bf16.msra.mxu1 %v831_v26 }
 0x168   : > { %844 = vmatpush.bf16.msra.mxu2 %v831_v26 }
 0x16a   : > { %820 = vmatmul.msk.bf16.vlgmr.msra.gmra.mxu0 %vm588_vm5, %v828_v27  ;;  %821 = vmatmul.msk.bf16.vlgmr.msra.gmra.mxu1 %vm588_vm5, %v829_v28 }
 0x16b   : > { %822 = vmatmul.msk.bf16.vlgmr.msra.gmra.mxu2 %vm588_vm5, %v830_v29 }
 0x1e7   : > { %v611_v30 = vpop.f32.mrf.mxu0  ;;  %v616_v31 = vpop.f32.mrf.mxu1 }
 0x1e8   : > { %626 = vst [vmem:[%s1165_s26] sm:$0xff] %v611_v30 }
 0x1e9   : > { %628 = vst [vmem:[%s1165_s26 + $0x10] sm:$0xff] %v616_v31 }
 0x1ee   : > { %v621_v32 = vpop.f32.mrf.mxu2 }
 0x1ef   : > { %630 = vst [vmem:[%s1165_s26 + $0x20] sm:$0xff] %v621_v32  ;;  %v613_v33 = vpop.f32.mrf.mxu0  ;;  %v618_v34 = vpop.f32.mrf.mxu1 }
 0x1f0   : > { %627 = vst [vmem:[%s1165_s26 + $0x8] sm:$0xff] %v613_v33 }
 0x1f1   : > { %629 = vst [vmem:[%s1165_s26 + $0x18] sm:$0xff] %v618_v34 }
 0x1f6   : > { %v623_v35 = vpop.f32.mrf.mxu2 }
 0x1f7   : > { %631 = vst [vmem:[%s1165_s26 + $0x28] sm:$0xff] %v623_v35 }
 0x1f8   : > { %959 = shalt.err (!%p956_p1)
}
 0x1f9   : > { %s1039_s26 = smov 128   ;;  %s1040_s1 = smov 256  }
 0x1fa   : > { %s1041_s9 = smov 8  }
 0x1fb   : > { %847 = dma.vmem_to_hbm [thread:$0]  (%p1118_p3), %s647_s6, 768, %s649_s19, %s633_s10, %s1039_s26, %s1040_s1, %s1041_s9  }
 0x1fc PF: > { %p853_p2 = scmp.ge.s32.totalorder %s1026_s22, 2  ;;  %s663_s11 = sand.u32 1, %s998_s15  }
 0x1fd   : > { %s664_s13 = scalar_lea.sflag [#allocation5], %s663_s11 }
 0x1fe   : > { %p850_p4 = pnand %p853_p2, %p1127_p8 }
 0x200   : > { %p851_p5 = pneg %p850_p4 }
 0x202   : > { %993 = dma.done.wait (%p851_p5), %s664_s13, 768  }
 0x203   : > { %995 = vsyncadd (%p851_p5), %s664_s13, 4294966528  ;;  %s17_s22 = sadd.s32 1, %s1026_s22   ;;  %s1277_s28 = sld [smem:[#allocation7_spill]] }
 0x204   : > { %p14_p6 = scmp.ge.s32.totalorder %s17_s22, 6   ;;  %s1278_s15 = smov %s1002_s16 }
 0x205   : > { %s1279_s16 = smov %s1006_s17  ;;  %s1280_s17 = smov %s1136_s7 }
 0x206   : > { %s1281_s18 = smov %s1018_s20  ;;  %s1282_s19 = smov %s1022_s21 }
 0x207   : > { %s1283_s20 = smov %s1286_s25  ;;  %16 = sbr.rel (!%p14_p6) target bundleno = 7 (0x7), region = 93 }
 0x209   : > { %s1284_s21 = smov %s1277_s28 }
 0x20c   :  { %670 = vsyncpa [#allocation5], 1 }
 0x20d   :  { %672 = vsyncpa [#allocation5 + $0x1], 1 }

</bundles_post_ra>
